<compile_context>
chip_gen: v7x
topology: tpu7x:2x2x1
jax: 0.10.0
libtpu: 0.0.40
codegen_flags: <defaults>
</compile_context>

<pallas_src>
import functools

import numpy as np
import jax
import jax.numpy as jnp
from jax.experimental import pallas as pl
from jax.experimental.pallas import tpu as pltpu

_LANE = 128
_SUBLANE = 16  # row tiles kept at multiples of 16 (bf16 sublane packing)


def _round_up(x, m):
    return ((x + m - 1) // m) * m


# --------------------------------------------------------------------------- #
# Host-side device probing (cached; results passed to the jitted wrapper as
# static args so the traced function stays purely shape-dependent).
# --------------------------------------------------------------------------- #

@functools.lru_cache(maxsize=1)
def _device_config():
    """Returns (vmem_capacity_bytes, two_tensorcores, cast_relu_in_compute_dtype)."""
    try:
        vmem_cap = int(pltpu.get_tpu_info().vmem_capacity_bytes)
    except Exception:
        vmem_cap = 64 << 20                 # conservative (v7x per-TC) fallback
    try:
        kind = jax.devices()[0].device_kind.lower()
    except Exception:
        kind = ""
    two_cores = vmem_cap <= (96 << 20)      # v7x: 64 MiB/TC, 2 TCs; v5e/v6e: 128 MiB, 1 TC
    cast_first = "v5" not in kind           # v6e/v7x have a bf16 VALU; v5e does not
    return vmem_cap, two_cores, cast_first


def _make_buffered(n):
    try:
        return pl.Buffered(n)
    except TypeError:
        return pl.Buffered(buffer_count=n)


@functools.lru_cache(maxsize=1)
def _single_buffer_supported():
    """Probe whether pipeline_mode=pl.Buffered(1) works for grid-invariant operands."""
    try:
        def k(x_ref, w_ref, o_ref):
            o_ref[...] = x_ref[...] + w_ref[...]

        f = pl.pallas_call(
            k,
            out_shape=jax.ShapeDtypeStruct((16, 128), jnp.float32),
            grid_spec=pltpu.PrefetchScalarGridSpec(
                num_scalar_prefetch=0,
                grid=(2,),
                in_specs=[
                    pl.BlockSpec((8, 128), lambda i: (i, 0)),
                    pl.BlockSpec((8, 128), lambda i: (0, 0),
                                 pipeline_mode=_make_buffered(1)),
                ],
                out_specs=pl.BlockSpec((8, 128), lambda i: (i, 0)),
            ),
        )
        x = jnp.ones((16, 128), jnp.float32)
        w = jnp.ones((8, 128), jnp.float32)
        jax.block_until_ready(f(x, w))
        return True
    except Exception:
        return False


def _choose_row_tile(n, two_cores):
    if two_cores:
        # v7x-like: only split the (parallel) grid when each step gets >= 256 rows;
        # otherwise a single step is lower latency and avoids duplicating weight DMA.
        max_tile = 256 if n >= 512 else 512
    else:
        # v5e/v6e: single TensorCore -> a 2-step "parallel" grid is just a serial
        # loop with per-step overhead; use one big tile.
        max_tile = 1024
    if n <= max_tile:
        return n            # block dim == full array dim: always a legal block shape
    return max_tile


# --------------------------------------------------------------------------- #
# Kernel
# --------------------------------------------------------------------------- #

def _mlp_fused_kernel(*refs, num_layers, compute_dtype, cast_first):
    """Fused MLP on one row-tile: refs = (x, w0, b0, ..., w_{L-1}, b_{L-1}, out)."""
    x_ref = refs[0]
    o_ref = refs[-1]
    h = x_ref[...]                                   # (tm, k_in) in x's dtype
    if h.dtype != compute_dtype:
        h = h.astype(compute_dtype)                  # in-kernel cast: no wrapper HBM pass
    for layer in range(num_layers):
        w = refs[1 + 2 * layer][...]                 # (k, m_pad) compute dtype (resident)
        b = refs[2 + 2 * layer][...]                 # (1, m_pad) float32       (resident)
        acc = jnp.dot(h, w, preferred_element_type=jnp.float32) + b
        if layer != num_layers - 1:
            if cast_first and compute_dtype != jnp.float32:
                h = jnp.maximum(acc.astype(compute_dtype), 0)   # bf16 VALU (v6e/v7x)
            else:
                h = jnp.maximum(acc, 0.0).astype(compute_dtype)
        else:
            o_ref[...] = acc.astype(o_ref.dtype)


# --------------------------------------------------------------------------- #
# Wrapper
# --------------------------------------------------------------------------- #

@functools.partial(
    jax.jit,
    static_argnames=("out_dim", "compute_dtype", "out_dtype", "single_buffer",
                     "vmem_cap", "two_cores", "cast_first", "row_tile"))
def _mlp_forward_pallas(x, params, *, out_dim, compute_dtype, out_dtype,
                        single_buffer, vmem_cap, two_cores, cast_first,
                        row_tile=None):
    """Fused MLP forward.  x: (N, in_dim); params: tuple of lane-padded (w, b)."""
    n, k_in = x.shape
    num_layers = len(params)
    assert params[0][0].shape[0] == k_in
    m_pads = tuple(w.shape[1] for w, _ in params)
    m_pad_last = m_pads[-1]

    x_isz = x.dtype.itemsize
    comp_isz = np.dtype(compute_dtype).itemsize
    out_isz = np.dtype(out_dtype).itemsize

    resident_bytes = sum(w.size * w.dtype.itemsize + b.size * b.dtype.itemsize
                         for w, b in params)
    weight_buffers = 1 if single_buffer else 2
    budget = max(int(vmem_cap) - (8 << 20), 16 << 20)
    max_width = max(m_pads + (_round_up(k_in, _LANE),))

    def footprint(tm):
        x_tiles = 2 * tm * k_in * x_isz              # double-buffered x row-tile
        o_tiles = 2 * tm * m_pad_last * out_isz      # double-buffered out row-tile
        temps = 2 * tm * max_width * (4 + comp_isz)  # f32 acc + activation temps (2x slack)
        return weight_buffers * resident_bytes + x_tiles + o_tiles + temps

    if row_tile is not None:
        tm = min(int(row_tile), n)
    else:
        tm = _choose_row_tile(n, two_cores)
    while footprint(tm) > budget and tm > _SUBLANE:
        tm = max(_SUBLANE, _round_up(tm // 2, _SUBLANE))
    if footprint(tm) > budget:
        # TODO(synk): tile the K/N feature dims with an 'arbitrary' inner grid axis and
        #             an f32 VMEM accumulator so very wide MLPs run fused on v7x (64 MiB).
        raise NotImplementedError("MLP weights too large to keep VMEM-resident")

    wmode = dict(pipeline_mode=_make_buffered(1)) if single_buffer else {}

    # Zero lane padding is exact through Linear+ReLU: padded weight rows/cols and bias
    # entries contribute 0 and the padded output columns are sliced off below.
    in_specs = [pl.BlockSpec((tm, k_in), lambda i: (i, 0))]        # x row-tile (streamed)
    inputs = [x]
    for w, b in params:
        kw, mw = w.shape
        in_specs.append(pl.BlockSpec((kw, mw), lambda i: (0, 0), **wmode))  # resident weight
        in_specs.append(pl.BlockSpec((1, mw), lambda i: (0, 0), **wmode))   # resident bias
        inputs += [w, b]

    kernel = functools.partial(_mlp_fused_kernel, num_layers=num_layers,
                               compute_dtype=compute_dtype, cast_first=cast_first)

    out = pl.pallas_call(
        kernel,
        out_shape=jax.ShapeDtypeStruct((n, m_pad_last), out_dtype),
        grid_spec=pltpu.PrefetchScalarGridSpec(
            num_scalar_prefetch=0,
            grid=(pl.cdiv(n, tm),),          # ragged last block handled by boundary masking
            in_specs=in_specs,
            out_specs=pl.BlockSpec((tm, m_pad_last), lambda i: (i, 0)),
        ),
        compiler_params=pltpu.CompilerParams(
            dimension_semantics=("parallel",),
            vmem_limit_bytes=int(budget)),
    )(*inputs)

    if m_pad_last != out_dim:
        out = out[:, :out_dim]               # lane padding only; batch dim is exact
    return out


class MLPPallas:
    """Pallas-backed MLP matching the PyTorch module's forward semantics."""

    def __init__(self, in_dim, hidden_dim, out_dim, num_layers=1,
                 compute_dtype=jnp.bfloat16, key=None):
        # Matches the original module's quirk: num_layers == 1 is allowed,
        # only num_layers < 1 raises (with this message).
        if num_layers < 1:
            raise ValueError("The number of layers must be greater than 1.")
        if isinstance(hidden_dim, int):
            dims = [in_dim] + (num_layers - 1) * [hidden_dim] + [out_dim]
        else:
            assert len(hidden_dim) == num_layers - 1
            dims = [in_dim] + list(hidden_dim) + [out_dim]
        self.dims = dims
        self.num_layers = num_layers
        self.out_dim = out_dim
        self.compute_dtype = compute_dtype

        if key is None:
            key = jax.random.PRNGKey(0)
        self.params = []          # un-padded f32 params (reference semantics)
        padded = []
        for layer_id in range(num_layers):
            fan_in, fan_out = dims[layer_id], dims[layer_id + 1]
            key, kw, kb = jax.random.split(key, 3)
            bound = 1.0 / float(fan_in) ** 0.5
            # PyTorch nn.Linear stores weight as (out, in); keep transposed (in, out).
            w_t = jax.random.uniform(kw, (fan_in, fan_out), jnp.float32,
                                     minval=-bound, maxval=bound)
            b = jax.random.uniform(kb, (fan_out,), jnp.float32,
                                   minval=-bound, maxval=bound)
            self.params.append((w_t, b))

            # Lane-dense, pre-cast, pre-reshaped copies used by the kernel.
            # Layer 0 keeps the un-padded contraction dim (x streams at its true width).
            k_pad = fan_in if layer_id == 0 else _round_up(fan_in, _LANE)
            m_pad = _round_up(fan_out, _LANE)
            w_pad = jnp.zeros((k_pad, m_pad), compute_dtype).at[
                :fan_in, :fan_out].set(w_t.astype(compute_dtype))
            b_pad = jnp.zeros((1, m_pad), jnp.float32).at[0, :fan_out].set(b)
            padded.append((w_pad, b_pad))
        self.padded_params = tuple(padded)

    def __call__(self, feats, out_dtype=None, row_tile=None):
        vmem_cap, two_cores, cast_first = _device_config()
        single_buffer = _single_buffer_supported()
        od = np.dtype(out_dtype) if out_dtype is not None else np.dtype(feats.dtype)
        return _mlp_forward_pallas(
            feats, self.padded_params,
            out_dim=self.out_dim,
            compute_dtype=self.compute_dtype,
            out_dtype=od,
            single_buffer=single_buffer,
            vmem_cap=vmem_cap,
            two_cores=two_cores,
            cast_first=cast_first,
            row_tile=row_tile)

    def reference(self, feats, compute_dtype=None):
        """Pure-JAX reference.  compute_dtype=None -> float32 math (PyTorch semantics);
        pass the kernel's compute dtype to replicate its mixed-precision chain."""
        out = feats
        for layer_id, (w_t, b) in enumerate(self.params):
            if compute_dtype is None:
                out = out @ w_t + b
            else:
                out = jnp.dot(out.astype(compute_dtype),
                              w_t.astype(compute_dtype),
                              preferred_element_type=jnp.float32) + b
            if layer_id != self.num_layers - 1:
                out = jnp.maximum(out, 0.0)
        return out


if __name__ == "__main__":
    key = jax.random.PRNGKey(0)
    kx, kx2, kx3, kp = jax.random.split(key, 4)

    batch, in_dim, hidden_dim, out_dim, num_layers = 128, 32, 64, 16, 3
    x = jax.random.normal(kx, (batch, in_dim), jnp.float32)

    # Default path: bf16 MXU operands, f32 accumulation, one fused kernel.
    mlp = MLPPallas(in_dim, hidden_dim, out_dim, num_layers=num_layers, key=kp)
    y = jax.block_until_ready(mlp(x))
    assert y.shape == (batch, out_dim)
    # Strict check vs a reference that uses the same mixed precision.
    y_ref_mixed = mlp.reference(x, compute_dtype=jnp.bfloat16)
    assert jnp.allclose(y, y_ref_mixed, atol=1e-4, rtol=1e-4), "mismatch (mixed ref)"
    # Loose check vs the pure-f32 (PyTorch-semantics) reference.
    y_ref_f32 = mlp.reference(x)
    assert jnp.allclose(y, y_ref_f32, atol=3e-2, rtol=3e-2), "mismatch (f32 ref)"

    # bf16 output path (halves out-tile VMEM and HBM writeback).
    yb = jax.block_until_ready(mlp(x, out_dtype=jnp.bfloat16))
    assert yb.dtype == jnp.bfloat16
    assert jnp.allclose(yb.astype(jnp.float32), y_ref_mixed, atol=1e-1, rtol=5e-2), \
        "mismatch (bf16 out)"

    # Full-f32 path: bit-tight vs the f32 reference.
    mlp32 = MLPPallas(in_dim, hidden_dim, out_dim, num_layers=num_layers,
                      compute_dtype=jnp.float32, key=kp)
    y32 = jax.block_until_ready(mlp32(x))
    assert jnp.allclose(y32, mlp32.reference(x), atol=1e-5, rtol=1e-5), "f32 mismatch"

    # Ragged batch (single-step tile equal to the full, non-multiple-of-8 batch dim).
    x2 = jax.random.normal(kx2, (100, in_dim), jnp.float32)
    y2 = jax.block_until_ready(mlp(x2))
    assert y2.shape == (100, out_dim)
    assert jnp.allclose(y2, mlp.reference(x2, compute_dtype=jnp.bfloat16),
                        atol=1e-4, rtol=1e-4), "ragged-batch mismatch"

    # Multi-step grid with a masked partial last block (forced small row tile), so the
    # boundary-masking path is exercised on every TPU generation.
    x3 = jax.random.normal(kx3, (200, in_dim), jnp.float32)
    y3 = jax.block_until_ready(mlp(x3, row_tile=64))
    assert y3.shape == (200, out_dim)
    assert jnp.allclose(y3, mlp.reference(x3, compute_dtype=jnp.bfloat16),
                        atol=1e-4, rtol=1e-4), "multi-step / masked-boundary mismatch"

    print("KERNEL_OK")
</pallas_src>

<mosaic_0001>
module attributes {stable_mosaic.version = 11 : i64} {
  func.func @k(%arg0: i32, %arg1: memref<8x128xf32, #tpu.memory_space<vmem>>, %arg2: memref<8x128xf32, #tpu.memory_space<vmem>>, %arg3: memref<8x128xf32, #tpu.memory_space<vmem>>) attributes {dimension_semantics = [#tpu.dimension_semantics<arbitrary>], iteration_bounds = array<i64: 2>, scalar_prefetch = 0 : i64, scratch_operands = 0 : i64, tpu.core_type = #tpu.core_type<tc>, window_params = [{transform_indices = @transform_0, window_bounds = array<i64: 8, 128>}, {pipeline_mode = #tpu.pipeline_mode<synchronous>, transform_indices = @transform_1, window_bounds = array<i64: 8, 128>}, {transform_indices = @transform_2, window_bounds = array<i64: 8, 128>}]} {
    %c0 = arith.constant 0 : index
    %c0_0 = arith.constant 0 : index
    %0 = vector.load %arg1[%c0, %c0_0] : memref<8x128xf32, #tpu.memory_space<vmem>>, vector<8x128xf32>
    %c0_1 = arith.constant 0 : index
    %c0_2 = arith.constant 0 : index
    %1 = vector.load %arg2[%c0_1, %c0_2] : memref<8x128xf32, #tpu.memory_space<vmem>>, vector<8x128xf32>
    %2 = arith.addf %0, %1 : vector<8x128xf32>
    %c0_3 = arith.constant 0 : index
    %c0_4 = arith.constant 0 : index
    %3 = vector.load %arg3[%c0_3, %c0_4] : memref<8x128xf32, #tpu.memory_space<vmem>>, vector<8x128xf32>
    tpu.vector_store %arg3[%c0_3, %c0_4], %2 {strides = array<i32>} : memref<8x128xf32, #tpu.memory_space<vmem>>, vector<8x128xf32>,
    return
  }
  func.func @transform_0(%arg0: i32) -> (i32, i32) {
    %c0_i32 = arith.constant 0 : i32
    %c0_i32_0 = arith.constant 0 : i32
    return %arg0, %c0_i32 : i32, i32
  }
  func.func @transform_1(%arg0: i32) -> (i32, i32) {
    %c0_i32 = arith.constant 0 : i32
    %c0_i32_0 = arith.constant 0 : i32
    %c0_i32_1 = arith.constant 0 : i32
    return %c0_i32, %c0_i32_0 : i32, i32
  }
  func.func @transform_2(%arg0: i32) -> (i32, i32) {
    %c0_i32 = arith.constant 0 : i32
    %c0_i32_0 = arith.constant 0 : i32
    return %arg0, %c0_i32 : i32, i32
  }
}

module attributes {stable_mosaic.version = 11 : i64} {
  func.func @_mlp_fused_kernel(%arg0: i32, %arg1: memref<128x32xf32, #tpu.memory_space<vmem>>, %arg2: memref<32x128xbf16, #tpu.memory_space<vmem>>, %arg3: memref<1x128xf32, #tpu.memory_space<vmem>>, %arg4: memref<128x128xbf16, #tpu.memory_space<vmem>>, %arg5: memref<1x128xf32, #tpu.memory_space<vmem>>, %arg6: memref<128x128xbf16, #tpu.memory_space<vmem>>, %arg7: memref<1x128xf32, #tpu.memory_space<vmem>>, %arg8: memref<128x128xf32, #tpu.memory_space<vmem>>) attributes {dimension_semantics = [#tpu.dimension_semantics<parallel>], iteration_bounds = array<i64: 1>, scalar_prefetch = 0 : i64, scratch_operands = 0 : i64, tpu.core_type = #tpu.core_type<tc>, window_params = [{transform_indices = @transform_0, window_bounds = array<i64: 128, 32>}, {pipeline_mode = #tpu.pipeline_mode<synchronous>, transform_indices = @transform_1, window_bounds = array<i64: 32, 128>}, {pipeline_mode = #tpu.pipeline_mode<synchronous>, transform_indices = @transform_2, window_bounds = array<i64: 1, 128>}, {pipeline_mode = #tpu.pipeline_mode<synchronous>, transform_indices = @transform_3, window_bounds = array<i64: 128, 128>}, {pipeline_mode = #tpu.pipeline_mode<synchronous>, transform_indices = @transform_4, window_bounds = array<i64: 1, 128>}, {pipeline_mode = #tpu.pipeline_mode<synchronous>, transform_indices = @transform_5, window_bounds = array<i64: 128, 128>}, {pipeline_mode = #tpu.pipeline_mode<synchronous>, transform_indices = @transform_6, window_bounds = array<i64: 1, 128>}, {transform_indices = @transform_7, window_bounds = array<i64: 128, 128>}]} {
    %c0 = arith.constant 0 : index
    %c0_0 = arith.constant 0 : index
    %0 = vector.load %arg1[%c0, %c0_0] : memref<128x32xf32, #tpu.memory_space<vmem>>, vector<128x32xf32>
    %1 = arith.truncf %0 : vector<128x32xf32> to vector<128x32xbf16>
    %c0_1 = arith.constant 0 : index
    %c0_2 = arith.constant 0 : index
    %2 = vector.load %arg2[%c0_1, %c0_2] : memref<32x128xbf16, #tpu.memory_space<vmem>>, vector<32x128xbf16>
    %c0_3 = arith.constant 0 : index
    %c0_4 = arith.constant 0 : index
    %3 = vector.load %arg3[%c0_3, %c0_4] : memref<1x128xf32, #tpu.memory_space<vmem>>, vector<1x128xf32>
    %cst = arith.constant dense<0.000000e+00> : vector<128x128xf32>
    %4 = tpu.matmul %1, %2, %cst {dimension_numbers = #tpu.dot_dimension_numbers<[1], [0], [0], [1], [0, 0, 1, 1], [], []>} : vector<128x32xbf16>, vector<32x128xbf16>, vector<128x128xf32> -> vector<128x128xf32>
    %5 = vector.broadcast %3 : vector<1x128xf32> to vector<128x128xf32>
    %6 = arith.addf %4, %5 : vector<128x128xf32>
    %7 = arith.truncf %6 : vector<128x128xf32> to vector<128x128xbf16>
    %cst_5 = arith.constant 0.000000e+00 : bf16
    %8 = vector.broadcast %cst_5 : bf16 to vector<128x128xbf16>
    %9 = arith.maximumf %7, %8 : vector<128x128xbf16>
    %c0_6 = arith.constant 0 : index
    %c0_7 = arith.constant 0 : index
    %10 = vector.load %arg4[%c0_6, %c0_7] : memref<128x128xbf16, #tpu.memory_space<vmem>>, vector<128x128xbf16>
    %c0_8 = arith.constant 0 : index
    %c0_9 = arith.constant 0 : index
    %11 = vector.load %arg5[%c0_8, %c0_9] : memref<1x128xf32, #tpu.memory_space<vmem>>, vector<1x128xf32>
    %cst_10 = arith.constant dense<0.000000e+00> : vector<128x128xf32>
    %12 = tpu.matmul %9, %10, %cst_10 {dimension_numbers = #tpu.dot_dimension_numbers<[1], [0], [0], [1], [0, 0, 1, 1], [], []>} : vector<128x128xbf16>, vector<128x128xbf16>, vector<128x128xf32> -> vector<128x128xf32>
    %13 = vector.broadcast %11 : vector<1x128xf32> to vector<128x128xf32>
    %14 = arith.addf %12, %13 : vector<128x128xf32>
    %15 = arith.truncf %14 : vector<128x128xf32> to vector<128x128xbf16>
    %cst_11 = arith.constant 0.000000e+00 : bf16
    %16 = vector.broadcast %cst_11 : bf16 to vector<128x128xbf16>
    %17 = arith.maximumf %15, %16 : vector<128x128xbf16>
    %c0_12 = arith.constant 0 : index
    %c0_13 = arith.constant 0 : index
    %18 = vector.load %arg6[%c0_12, %c0_13] : memref<128x128xbf16, #tpu.memory_space<vmem>>, vector<128x128xbf16>
    %c0_14 = arith.constant 0 : index
    %c0_15 = arith.constant 0 : index
    %19 = vector.load %arg7[%c0_14, %c0_15] : memref<1x128xf32, #tpu.memory_space<vmem>>, vector<1x128xf32>
    %cst_16 = arith.constant dense<0.000000e+00> : vector<128x128xf32>
    %20 = tpu.matmul %17, %18, %cst_16 {dimension_numbers = #tpu.dot_dimension_numbers<[1], [0], [0], [1], [0, 0, 1, 1], [], []>} : vector<128x128xbf16>, vector<128x128xbf16>, vector<128x128xf32> -> vector<128x128xf32>
    %21 = vector.broadcast %19 : vector<1x128xf32> to vector<128x128xf32>
    %22 = arith.addf %20, %21 : vector<128x128xf32>
    %c0_17 = arith.constant 0 : index
    %c0_18 = arith.constant 0 : index
    %23 = vector.load %arg8[%c0_17, %c0_18] : memref<128x128xf32, #tpu.memory_space<vmem>>, vector<128x128xf32>
    tpu.vector_store %arg8[%c0_17, %c0_18], %22 {strides = array<i32>} : memref<128x128xf32, #tpu.memory_space<vmem>>, vector<128x128xf32>,
    return
  }
  func.func @transform_0(%arg0: i32) -> (i32, i32) {
    %c0_i32 = arith.constant 0 : i32
    %c0_i32_0 = arith.constant 0 : i32
    return %arg0, %c0_i32 : i32, i32
  }
  func.func @transform_1(%arg0: i32) -> (i32, i32) {
    %c0_i32 = arith.constant 0 : i32
    %c0_i32_0 = arith.constant 0 : i32
    %c0_i32_1 = arith.constant 0 : i32
    return %c0_i32, %c0_i32_0 : i32, i32
  }
  func.func @transform_2(%arg0: i32) -> (i32, i32) {
    %c0_i32 = arith.constant 0 : i32
    %c0_i32_0 = arith.constant 0 : i32
    %c0_i32_1 = arith.constant 0 : i32
    return %c0_i32, %c0_i32_0 : i32, i32
  }
  func.func @transform_3(%arg0: i32) -> (i32, i32) {
    %c0_i32 = arith.constant 0 : i32
    %c0_i32_0 = arith.constant 0 : i32
    %c0_i32_1 = arith.constant 0 : i32
    return %c0_i32, %c0_i32_0 : i32, i32
  }
  func.func @transform_4(%arg0: i32) -> (i32, i32) {
    %c0_i32 = arith.constant 0 : i32
    %c0_i32_0 = arith.constant 0 : i32
    %c0_i32_1 = arith.constant 0 : i32
    return %c0_i32, %c0_i32_0 : i32, i32
  }
  func.func @transform_5(%arg0: i32) -> (i32, i32) {
    %c0_i32 = arith.constant 0 : i32
    %c0_i32_0 = arith.constant 0 : i32
    %c0_i32_1 = arith.constant 0 : i32
    return %c0_i32, %c0_i32_0 : i32, i32
  }
  func.func @transform_6(%arg0: i32) -> (i32, i32) {
    %c0_i32 = arith.constant 0 : i32
    %c0_i32_0 = arith.constant 0 : i32
    %c0_i32_1 = arith.constant 0 : i32
    return %c0_i32, %c0_i32_0 : i32, i32
  }
  func.func @transform_7(%arg0: i32) -> (i32, i32) {
    %c0_i32 = arith.constant 0 : i32
    %c0_i32_0 = arith.constant 0 : i32
    return %arg0, %c0_i32 : i32, i32
  }
}

</mosaic_0001>

<bundles_post_ra>
// kernel: tpu_custom_call.1
= control target key start
LH: loop header
LB: loop body
LE: loop exit
PB: predicated region body
PF: predicated region fallthrough
CT: control target
= control target key end

     0   :  { %7 = vsyncpa [#allocation3], 0  ;;  %s690_s0 = inlined_call_operand.hbm [shape: f32[16,128], index: 0, kind: input, shape index: {}]   ;;  %s691_s1 = inlined_call_operand.hbm [shape: f32[8,128], index: 1, kind: input, shape index: {}]   ;;  %s692_s2 = inlined_call_operand.hbm [shape: f32[16,128], index: 2, kind: output, shape index: {}]  }
   0x1   :  { %9 = vsyncpa [#allocation3 + $0x1], 0 }
   0x2   :  { %10 = vsyncpa [#allocation6], 0 }
   0x3   :  { %11 = vsyncpa [#allocation4], 0 }
   0x4   :  { %13 = vsyncpa [#allocation4 + $0x1], 0  ;;  %s489_s9 = smov 0   ;;  %s491_s10 = smov 0  }
   0x5   :  { %s493_s11 = smov 0   ;;  %s495_s12 = smov 0  }
   0x6 LB: > { %s510_s13 = sadd.s32 4294967295, %s469_s12   ;;  %s270_s14 = sadd.s32 4294967294, %s469_s12   ;;  %s469_s12 = sphi %s495_s12, %s716_s12   ;;  %s465_s11 = sphi %s493_s11, %s715_s11   ;;  %s461_s10 = sphi %s491_s10, %s714_s10   ;;  %s457_s9 = sphi %s489_s9, %s713_s9  }
   0x7   : > { %p39_p0 = scmp.ne.s32.totalorder %s461_s10, %s457_s9  ;;  %p693_p1 = scmp.eq.s32.totalorder %s510_s13, 0 }
   0x8   : > { %p90_p3 = scmp.eq.s32.totalorder %s270_s14, 1  ;;  %p271_p5 = scmp.ge.s32.totalorder %s469_s12, 1 }
   0x9   : > { %p519_p4 = por %p693_p1, %p39_p0  ;;  %p97_p7 = scmp.lt.s32.totalorder %s469_s12, 3 }
   0xa   : > { %p524_p6 = por %p90_p3, %p39_p0  ;;  %s471_s18 = smov [#allocation5]  }
   0xb   : > { %s696_s15 = scalar_select %p519_p4, 1, 0 }
   0xc   : > { %s697_s16 = scalar_select %p524_p6, 1, 0 }
   0xd   : > { %p529_p8 = pnand %p271_p5, %p97_p7  ;;  %s110_s19 = sshll.u32 %s471_s18, 4  ;;  %s111_s19 = int_to_ptr.vmem [resolvable:$true] %s110_s19 }
   0xe   : > { %s537_s20 = sadd.s32 1, %s469_s12   ;;  %s26_s24 = sadd.s32 1, %s465_s11 }
   0xf   : > { %s698_s17 = scalar_select %p529_p8, 1, 0 }
  0x10   : > { %p292_p10 = pneg %p529_p8  ;;  %s23_s22 = ssub.s32 %s469_s12, %s537_s20 }
  0x11   : > { %p547_p12 = scmp.eq.s32.totalorder %s23_s22, 0  ;;  %s341_s27 = scalar_lea.hbm %s691_s1, 128 }
  0x12   : > { %p541_p11 = pnand %p292_p10, %p693_p1  ;;  %p342_p0 = scmp.ne.s32.totalorder %s691_s1, %s341_s27 }
  0x13   : > { %s700_s23 = scalar_select %p547_p12, 1, 0 }
  0x14   : > { %p343_p3 = pneg %p541_p11  ;;  %p348_p10 = scmp.lt.u32.totalorder %s341_s27, %s691_s1 }
  0x16   : > { %p344_p5 = pnand %p343_p3, %p342_p0 }
  0x18   : > { %p345_p7 = pneg %p344_p5 }
  0x1a   : > { %p350_p9 = pnand %p348_p10, %p345_p7 }
  0x1c   : > { %353 = shalt.err (!%p350_p9)
}
  0x1d   : > { %s354_s4 = scalar_lea.vmem %s111_s19, 128  ;;  %p362_p6 = scmp.lt.s32.totalorder %s111_s19, %s111_s19 }
  0x1e   : > { %p355_p1 = scmp.ne.s32.totalorder %s111_s19, %s354_s4  ;;  %p363_p4 = scmp.lt.s32.totalorder %s354_s4, %s354_s4 }
  0x20   : > { %p357_p2 = pnand %p355_p1, %p343_p3  ;;  %p364_p8 = por %p363_p4, %p362_p6 }
  0x22   : > { %p358_p13 = pneg %p357_p2 }
  0x24   : > { %p365_p12 = pnand %p364_p8, %p358_p13 }
  0x26   : > { %368 = shalt.err (!%p365_p12)
}
  0x27   : > { %295 = dma.hbm_to_vmem [thread:$0]  (!%p541_p11), %s691_s1, 128, %s111_s19, [#allocation6]  }
  0x28   : > { %p701_p1 = scmp.ne.s32.totalorder %s700_s23, 0  ;;  %p34_p2 = scmp.eq.s32.totalorder %s469_s12, 0 }
  0x29   : > { %p702_p4 = scmp.ne.s32.totalorder %s465_s11, %s461_s10  ;;  %p703_p6 = scmp.eq.s32.totalorder %s510_s13, 1 }
  0x2a   : > { %s573_s7 = scalar_select %p701_p1, %s465_s11, %s26_s24  }
  0x2b   : > { %p581_p8 = por %p703_p6, %p702_p4  ;;  %p305_p9 = scmp.lt.s32.totalorder %s469_s12, 2 }
  0x2c   : > { %s121_s14 = sand.u32 1, %s465_s11   ;;  %p705_p12 = pmov %p702_p4 }
  0x2d   : > { %s274_s18 = sshll.u32 %s121_s14, 3  ;;  %s275_s21 = sshll.u32 %s469_s12, 7 }
  0x2e   : > { %p35_p13 = por %p34_p2, %p705_p12  ;;  %s594_s19 = scalar_lea.hbm %s690_s0, %s275_s21 }
  0x2f   : > { %s125_s23 = scalar_lea.vmem [#allocation2], %s274_s18  ;;  %s122_s27 = scalar_lea.sflag [#allocation3], %s121_s14 }
  0x30   : > { %s132_s24 = sshll.u32 %s125_s23, 4  ;;  %p596_p11 = pnand %p305_p9, %p35_p13  ;;  %s600_s24 = int_to_ptr.vmem [resolvable:$true] %s132_s24 }
  0x31   : > { %s369_s28 = scalar_lea.hbm %s594_s19, 128  ;;  %s374_s3 = scalar_lea.hbm %s690_s0, 256 }
  0x32   : > { %p370_p0 = scmp.ne.s32.totalorder %s594_s19, %s369_s28  ;;  %p371_p3 = pneg %p596_p11 }
  0x33   : > { %p375_p10 = scmp.lt.u32.totalorder %s594_s19, %s690_s0  ;;  %p376_p1 = scmp.lt.u32.totalorder %s374_s3, %s369_s28 }
  0x34   : > { %p372_p5 = pnand %p371_p3, %p370_p0  ;;  %p378_p4 = scmp.lt.u32.totalorder %s369_s28, %s594_s19 }
  0x35   : > { %p377_p2 = por %p376_p1, %p375_p10 }
  0x36   : > { %p373_p7 = pneg %p372_p5 }
  0x37   : > { %p379_p6 = por %p378_p4, %p377_p2 }
  0x39   : > { %p380_p9 = pnand %p379_p6, %p373_p7 }
  0x3b   : > { %383 = shalt.err (!%p380_p9)
}
  0x3c   : > { %s384_s6 = scalar_lea.vmem %s600_s24, 128  ;;  %s472_s14 = smov [#allocation2]  }
  0x3d   : > { %p385_p12 = scmp.ne.s32.totalorder %s600_s24, %s384_s6  ;;  %s389_s18 = sshll.u32 %s472_s14, 4  ;;  %s390_s18 = int_to_ptr.vmem [resolvable:$false] %s389_s18 }
  0x3e   : > { %s391_s21 = scalar_lea.vmem %s390_s18, 256  ;;  %p392_p5 = scmp.lt.s32.totalorder %s600_s24, %s390_s18 }
  0x3f   : > { %p387_p13 = pnand %p385_p12, %p371_p3  ;;  %p393_p10 = scmp.lt.s32.totalorder %s391_s21, %s384_s6 }
  0x41   : > { %p388_p0 = pneg %p387_p13  ;;  %p394_p1 = por %p393_p10, %p392_p5 }
  0x43   : > { %p395_p2 = pnand %p394_p1, %p388_p0 }
  0x45   : > { %398 = shalt.err (!%p395_p2)
}
  0x46   : > { %299 = dma.hbm_to_vmem [thread:$0]  (!%p596_p11), %s594_s19, 128, %s600_s24, %s122_s27  }
  0x47   : > { %p707_p7 = scmp.ne.s32.totalorder %s698_s17, 0 }
  0x48   : > { %s630_s22 = sand.u32 (!%p707_p7), 1, %s461_s10   ;;  %p708_p3 = scmp.ne.s32.totalorder (!%p707_p7), %s696_s15, 0 }
  0x49   : > { %141 = sbr.rel (%p707_p7) target bundleno = 109 (0x6d), region = 28  ;;  %s277_s25 = sshll.u32 (!%p707_p7), %s630_s22, 3 }
  0x4a   : > { %s144_s23 = scalar_lea.sflag (!%p707_p7), [#allocation3], %s630_s22  ;;  %s147_s28 = scalar_lea.vmem (!%p707_p7), [#allocation2], %s277_s25 }
  0x50   : > { %444 = dma.done.wait (%p708_p3), %s144_s23, 128  }
  0x51   : > { %446 = vsyncadd (%p708_p3), %s144_s23, 4294967168  ;;  %p709_p4 = scmp.eq.s32.totalorder %s510_s13, 0 }
  0x53   : > { %448 = dma.done.wait (%p709_p4), [#allocation6], 128   ;;  %p710_p11 = pmov %p709_p4 }
  0x54   : > { %s171_s17 = scalar_lea.vmem [#allocation7], %s277_s25  ;;  %s281_s24 = sshll.u32 %s510_s13, 7  ;;  %v172_v0 = vld [vmem:[%s147_s28] sm:$0xff]  ;;  %v173_v1 = vld [vmem:[#allocation5] sm:$0xff] }
  0x55   : > { %450 = vsyncadd (%p710_p11), [#allocation6], 4294967168  ;;  %s190_s19 = sshll.u32 %s171_s17, 4  ;;  %v174_v2 = vadd.f32 %v173_v1, %v172_v0  ;;  %s648_s27 = scalar_lea.hbm %s692_s2, %s281_s24  ;;  %s643_s19 = int_to_ptr.vmem [resolvable:$true] %s190_s19 }
  0x56   : > { %s177_s29 = scalar_lea.sflag [#allocation4], %s630_s22  ;;  %s399_s30 = scalar_lea.vmem %s643_s19, 128 }
  0x57   : > { %175 = vst [vmem:[%s171_s17] sm:$0xff] %v174_v2  ;;  %p400_p6 = scmp.ne.s32.totalorder %s643_s19, %s399_s30  ;;  %s473_s13 = smov [#allocation7]  }
  0x58   : > { %s403_s3 = sshll.u32 %s473_s13, 4  ;;  %s404_s3 = int_to_ptr.vmem [resolvable:$false] %s403_s3 }
  0x59   : > { %p401_p9 = pnand %p400_p6, %p581_p8  ;;  %s405_s4 = scalar_lea.vmem %s404_s3, 256 }
  0x5a   : > { %p406_p13 = scmp.lt.s32.totalorder %s643_s19, %s404_s3  ;;  %p407_p0 = scmp.lt.s32.totalorder %s405_s4, %s399_s30 }
  0x5b   : > { %p402_p12 = pneg %p401_p9 }
  0x5c   : > { %p408_p5 = por %p407_p0, %p406_p13 }
  0x5e   : > { %p409_p10 = pnand %p408_p5, %p402_p12 }
  0x60   : > { %412 = shalt.err (!%p409_p10)
}
  0x61   : > { %s413_s5 = scalar_lea.hbm %s648_s27, 128  ;;  %s417_s18 = scalar_lea.hbm %s692_s2, 256 }
  0x62   : > { %p414_p1 = scmp.ne.s32.totalorder %s648_s27, %s413_s5  ;;  %p418_p3 = scmp.lt.u32.totalorder %s648_s27, %s692_s2 }
  0x63   : > { %p419_p4 = scmp.lt.u32.totalorder %s417_s18, %s413_s5  ;;  %p421_p6 = scmp.lt.u32.totalorder %s413_s5, %s648_s27 }
  0x64   : > { %p415_p2 = pnand %p414_p1, %p581_p8 }
  0x65   : > { %p420_p11 = por %p419_p4, %p418_p3 }
  0x66   : > { %p416_p7 = pneg %p415_p2 }
  0x67   : > { %p422_p9 = por %p421_p6, %p420_p11 }
  0x69   : > { %p423_p12 = pnand %p422_p9, %p416_p7 }
  0x6b   : > { %426 = shalt.err (!%p423_p12)
}
  0x6c   : > { %290 = dma.vmem_to_hbm [thread:$0]  (%p581_p8), %s643_s19, 128, %s648_s27, %s177_s29  }
  0x6d PF: > { %s202_s25 = sand.u32 1, %s457_s9   ;;  %p711_p13 = scmp.ne.s32.totalorder %s697_s16, 0 }
  0x6e   : > { %p712_p0 = scmp.ge.s32.totalorder %s469_s12, 2  ;;  %s203_s23 = scalar_lea.sflag [#allocation4], %s202_s25 }
  0x70   : > { %p301_p5 = pnand %p712_p0, %p711_p13 }
  0x72   : > { %452 = dma.done.wait (!%p301_p5), %s203_s23, 128  }
  0x73   : > { %454 = vsyncadd (!%p301_p5), %s203_s23, 4294967168  ;;  %p16_p10 = scmp.ge.s32.totalorder %s537_s20, 4   ;;  %s713_s9 = smov %s461_s10 }
  0x74   : > { %s714_s10 = smov %s465_s11  ;;  %s715_s11 = smov %s573_s7 }
  0x75   : > { %s716_s12 = smov %s537_s20  ;;  %18 = sbr.rel (!%p16_p10) target bundleno = 6 (0x6), region = 77 }
  0x7c   :  { %208 = vsyncpa [#allocation3], 1 }
  0x7d   :  { %210 = vsyncpa [#allocation3 + $0x1], 1 }
  0x7e   :  { %211 = vsyncpa [#allocation6], 1 }
  0x7f   :  { %212 = vsyncpa [#allocation4], 1 }
  0x80   :  { %214 = vsyncpa [#allocation4 + $0x1], 1 }

// kernel: _mlp_forward_pallas.1
= control target key start
LH: loop header
LB: loop body
LE: loop exit
PB: predicated region body
PF: predicated region fallthrough
CT: control target
= control target key end

     0   :  { %vm74_vm0 = vcmask 261120   ;;  %v758_v52 = vmov 0   ;;  %s982_s1 = inlined_call_operand.vmem [shape: bf16[32,128], index: 1, kind: input, shape index: {}]   ;;  %s983_s0 = inlined_call_operand.vmem [shape: f32[128,32], index: 0, kind: input, shape index: {}]   ;;  %s984_s3 = inlined_call_operand.vmem [shape: bf16[128,128], index: 3, kind: input, shape index: {}]   ;;  %s985_s5 = inlined_call_operand.vmem [shape: bf16[128,128], index: 5, kind: input, shape index: {}]   ;;  %s986_s2 = inlined_call_operand.vmem [shape: f32[1,128], index: 2, kind: input, shape index: {}]   ;;  %s987_s4 = inlined_call_operand.vmem [shape: f32[1,128], index: 4, kind: input, shape index: {}]   ;;  %s988_s6 = inlined_call_operand.vmem [shape: f32[1,128], index: 6, kind: input, shape index: {}]   ;;  %s989_s7 = inlined_call_operand.vmem [shape: f32[128,128], index: 7, kind: output, shape index: {}]  }
   0x1   :  { %v740_v0 = vld [vmem:[%s982_s1] sm:$0xff]   ;;  %v741_v1 = vld [vmem:[%s982_s1 + $0x8] sm:$0xff]   ;;  %v29_v5 = vld [vmem:[%s983_s0 + $0x10] sm:$0xff] }
   0x2   :  { %655 = vmatprep.subr.bf16.mxu0 %v740_v0  ;;  %v27_v2 = vld [vmem:[%s983_s0] sm:$0xff]  ;;  %v28_v3 = vld [vmem:[%s983_s0 + $0x8] sm:$0xff]  ;;  %v30_v6 = vld [vmem:[%s983_s0 + $0x18] sm:$0xff] }
   0x3   :  { %656 = vmatpush3.bf16.msra.mxu0 %v740_v0  ;;  %v43_v4 = vpack.c.bf16 %v28_v3, %v27_v2  ;;  %v31_v7 = vld [vmem:[%s983_s0 + $0x20] sm:$0xff]  ;;  %v32_v8 = vld [vmem:[%s983_s0 + $0x28] sm:$0xff]  ;;  %v44_v9 = vpack.c.bf16 %v30_v6, %v29_v5  ;;  %v33_v12 = vld [vmem:[%s983_s0 + $0x30] sm:$0xff] }
   0x4   :  { %657 = vmatprep.subr.bf16.mxu0 %v741_v1  ;;  %v45_v10 = vpack.c.bf16 %v32_v8, %v31_v7  ;;  %v742_v11 = vld [vmem:[%s984_s3] sm:$0xff]   ;;  %v34_v13 = vld [vmem:[%s983_s0 + $0x38] sm:$0xff]  ;;  %v743_v14 = vld [vmem:[%s984_s3 + $0x8] sm:$0xff]  }
   0x5   :  { %659 = vmatprep.mubr.msk.bf16.mxu0 %vm74_vm0, %v43_v4  ;;  %v35_v15 = vld [vmem:[%s983_s0 + $0x40] sm:$0xff]  ;;  %675 = vmatprep.subr.bf16.mxu1 %v742_v11  ;;  %v36_v16 = vld [vmem:[%s983_s0 + $0x48] sm:$0xff]  ;;  %v744_v17 = vld [vmem:[%s984_s3 + $0x10] sm:$0xff]   ;;  %v46_v18 = vpack.c.bf16 %v34_v13, %v33_v12 }
   0x6   :  { %676 = vmatpush3.bf16.msra.mxu1 %v742_v11  ;;  %v47_v19 = vpack.c.bf16 %v36_v16, %v35_v15  ;;  %v745_v20 = vld [vmem:[%s984_s3 + $0x18] sm:$0xff]   ;;  %v37_v21 = vld [vmem:[%s983_s0 + $0x50] sm:$0xff]  ;;  %v39_v23 = vld [vmem:[%s983_s0 + $0x60] sm:$0xff] }
   0x7   :  { %658 = vmatpush3.bf16.msra.mxu0 %v741_v1  ;;  %677 = vmatprep.subr.bf16.mxu1 %v743_v14  ;;  %v38_v22 = vld [vmem:[%s983_s0 + $0x58] sm:$0xff]  ;;  %v40_v24 = vld [vmem:[%s983_s0 + $0x68] sm:$0xff]  ;;  %v746_v25 = vld [vmem:[%s984_s3 + $0x20] sm:$0xff]  }
   0x8   :  { %v48_v26 = vpack.c.bf16 %v38_v22, %v37_v21  ;;  %v49_v27 = vpack.c.bf16 %v40_v24, %v39_v23  ;;  %v747_v28 = vld [vmem:[%s984_s3 + $0x28] sm:$0xff]   ;;  %v41_v29 = vld [vmem:[%s983_s0 + $0x70] sm:$0xff]  ;;  %v42_v30 = vld [vmem:[%s983_s0 + $0x78] sm:$0xff] }
   0x9   :  { %v50_v31 = vpack.c.bf16 %v42_v30, %v41_v29  ;;  %v748_v32 = vld [vmem:[%s984_s3 + $0x30] sm:$0xff]   ;;  %v749_v33 = vld [vmem:[%s984_s3 + $0x38] sm:$0xff]   ;;  %v750_v34 = vld [vmem:[%s985_s5] sm:$0xff]  }
   0xa   :  { %660 = vmatmul.mubr.msk.bf16.vlgmr.msra.gmra.mrb[0].mxu0 %vm74_vm0, %v44_v9  ;;  %678 = vmatpush3.bf16.msra.mxu1 %v743_v14  ;;  %v751_v35 = vld [vmem:[%s985_s5 + $0x8] sm:$0xff]   ;;  %v752_v36 = vld [vmem:[%s985_s5 + $0x10] sm:$0xff]   ;;  %v753_v37 = vld [vmem:[%s985_s5 + $0x18] sm:$0xff]  }
   0xb   :  { %663 = vmatprep.mubr.msk.bf16.mxu0 %vm74_vm0, %v45_v10  ;;  %679 = vmatprep.subr.bf16.mxu1 %v744_v17  ;;  %v754_v38 = vld [vmem:[%s985_s5 + $0x20] sm:$0xff]   ;;  %v755_v39 = vld [vmem:[%s985_s5 + $0x28] sm:$0xff]  }
   0xc   :  { %707 = vmatprep.subr.bf16.mxu0 %v750_v34  ;;  %v584_v41 = vld [vmem:[%s986_s2] ss:$0 sm:$0xff] }
   0xd   :  { %708 = vmatpush3.bf16.msra.mxu0 %v750_v34  ;;  %v595_v29 = vld [vmem:[%s987_s4] ss:$0 sm:$0xff] }
   0xe   :  { %680 = vmatpush3.bf16.msra.mxu1 %v744_v17  ;;  %709 = vmatprep.subr.bf16.mxu0 %v751_v35 }
   0xf   :  { %681 = vmatprep.subr.bf16.mxu1 %v745_v20 }
  0x11   :  { %710 = vmatpush3.bf16.msra.mxu0 %v751_v35 }
  0x12   :  { %664 = vmatmul.mubr.msk.bf16.gmra.mrb[4].mxu0 %vm74_vm0, %v46_v18  ;;  %682 = vmatpush3.bf16.msra.mxu1 %v745_v20 }
  0x13   :  { %667 = vmatprep.mubr.msk.bf16.mxu0 %vm74_vm0, %v47_v19  ;;  %683 = vmatprep.subr.bf16.mxu1 %v746_v25 }
  0x14   :  { %711 = vmatprep.subr.bf16.mxu0 %v752_v36 }
  0x15   :  { %712 = vmatpush3.bf16.msra.mxu0 %v752_v36 }
  0x16   :  { %684 = vmatpush3.bf16.msra.mxu1 %v746_v25  ;;  %713 = vmatprep.subr.bf16.mxu0 %v753_v37 }
  0x17   :  { %685 = vmatprep.subr.bf16.mxu1 %v747_v28 }
  0x19   :  { %714 = vmatpush3.bf16.msra.mxu0 %v753_v37 }
  0x1a   :  { %668 = vmatmul.mubr.msk.bf16.gmra.mrb[8].mxu0 %vm74_vm0, %v48_v26  ;;  %686 = vmatpush3.bf16.msra.mxu1 %v747_v28  ;;  %v756_v26 = vld [vmem:[%s985_s5 + $0x30] sm:$0xff]  }
  0x1b   :  { %671 = vmatprep.mubr.msk.bf16.mxu0 %vm74_vm0, %v49_v27  ;;  %687 = vmatprep.subr.bf16.mxu1 %v748_v32  ;;  %v757_v27 = vld [vmem:[%s985_s5 + $0x38] sm:$0xff]  }
  0x1c   :  { %715 = vmatprep.subr.bf16.mxu0 %v754_v38 }
  0x1d   :  { %716 = vmatpush3.bf16.msra.mxu0 %v754_v38 }
  0x1e   :  { %688 = vmatpush3.bf16.msra.mxu1 %v748_v32  ;;  %717 = vmatprep.subr.bf16.mxu0 %v755_v39 }
  0x1f   :  { %689 = vmatprep.subr.bf16.mxu1 %v749_v33 }
  0x21   :  { %718 = vmatpush3.bf16.msra.mxu0 %v755_v39 }
  0x22   :  { %672 = vmatmul.mubr.msk.bf16.gmra.mrb[12].mxu0 %vm74_vm0, %v50_v31  ;;  %690 = vmatpush3.bf16.msra.mxu1 %v749_v33 }
  0x23   :  { %719 = vmatprep.subr.bf16.mxu0 %v756_v26 }
  0x25   :  { %720 = vmatpush3.bf16.msra.mxu0 %v756_v26 }
  0x26   :  { %721 = vmatprep.subr.bf16.mxu0 %v757_v27 }
  0x29   :  { %722 = vmatpush3.bf16.msra.mxu0 %v757_v27 }
  0xdd   :  { %v661_v40 = vpop.f32.mrb[0].mxu0 }
  0xde   :  { %v133_v42 = vpop.f32.mrb[1].mxu0  ;;  %v142_v44 = vadd.f32 %v661_v40, %v584_v41 }
  0xdf   :  { %v662_v43 = vpop.f32.mrb[2].mxu0  ;;  %v134_v47 = vadd.f32 %v584_v41, %v133_v42 }
  0xe0   :  { %v145_v45 = vadd.f32 %v662_v43, %v584_v41  ;;  %v136_v46 = vpop.f32.mrb[3].mxu0 }
  0xe1   :  { %v137_v48 = vadd.f32 %v584_v41, %v136_v46 }
  0xe2   :  { %v197_v49 = vpack.c.bf16 %v145_v45, %v142_v44 }
  0xe3   :  { %v196_v50 = vpack.c.bf16 %v137_v48, %v134_v47 }
  0xe4   :  { %v205_v55 = vmax.bf16 %v758_v52, %v197_v49 }
  0xe5   :  { %v665_v51 = vpop.f32.mrb[4].mxu0  ;;  %v204_v53 = vmax.bf16 %v758_v52, %v196_v50 }
  0xe6   :  { %v149_v54 = vpop.f32.mrb[5].mxu0  ;;  %v158_v57 = vadd.f32 %v665_v51, %v584_v41 }
  0xe7   :  { %v666_v56 = vpop.f32.mrb[6].mxu0  ;;  %691 = vmatprep.mubr.bf16.mxu1 %v204_v53  ;;  %v150_v60 = vadd.f32 %v584_v41, %v149_v54 }
  0xe8   :  { %v161_v58 = vadd.f32 %v666_v56, %v584_v41  ;;  %v152_v59 = vpop.f32.mrb[7].mxu0  ;;  %692 = vmatmul.mubr.bf16.vlgmr.msra.gmra.mrb[0].mxu1 %v205_v55 }
  0xe9   :  { %v153_v61 = vadd.f32 %v584_v41, %v152_v59 }
  0xea   :  { %v199_v62 = vpack.c.bf16 %v161_v58, %v158_v57 }
  0xeb   :  { %v198_v63 = vpack.c.bf16 %v153_v61, %v150_v60 }
  0xec   :  { %v207_v3 = vmax.bf16 %v758_v52, %v199_v62 }
  0xed   :  { %v669_v0 = vpop.f32.mrb[8].mxu0  ;;  %v206_v1 = vmax.bf16 %v758_v52, %v198_v63 }
  0xee   :  { %v165_v2 = vpop.f32.mrb[9].mxu0  ;;  %v174_v5 = vadd.f32 %v669_v0, %v584_v41 }
  0xef   :  { %v670_v4 = vpop.f32.mrb[10].mxu0  ;;  %695 = vmatprep.mubr.bf16.mxu1 %v206_v1  ;;  %v166_v8 = vadd.f32 %v584_v41, %v165_v2 }
  0xf0   :  { %v177_v6 = vadd.f32 %v670_v4, %v584_v41  ;;  %v168_v7 = vpop.f32.mrb[11].mxu0  ;;  %696 = vmatmul.mubr.bf16.gmra.mrb[4].mxu1 %v207_v3 }
  0xf1   :  { %v169_v9 = vadd.f32 %v584_v41, %v168_v7 }
  0xf2   :  { %v201_v10 = vpack.c.bf16 %v177_v6, %v174_v5 }
  0xf3   :  { %v200_v11 = vpack.c.bf16 %v169_v9, %v166_v8 }
  0xf4   :  { %v209_v15 = vmax.bf16 %v758_v52, %v201_v10 }
  0xf5   :  { %v673_v12 = vpop.f32.mrb[12].mxu0  ;;  %v208_v13 = vmax.bf16 %v758_v52, %v200_v11 }
  0xf6   :  { %v181_v14 = vpop.f32.mrb[13].mxu0  ;;  %v190_v17 = vadd.f32 %v673_v12, %v584_v41 }
  0xf7   :  { %v674_v16 = vpop.f32.mrb[14].mxu0  ;;  %699 = vmatprep.mubr.bf16.mxu1 %v208_v13  ;;  %v182_v20 = vadd.f32 %v584_v41, %v181_v14  ;;  %v604_v14 = vld [vmem:[%s988_s6] ss:$0 sm:$0xff] }
  0xf8   :  { %v193_v18 = vadd.f32 %v674_v16, %v584_v41  ;;  %v184_v19 = vpop.f32.mrb[15].mxu0  ;;  %700 = vmatmul.mubr.bf16.gmra.mrb[8].mxu1 %v209_v15 }
  0xf9   :  { %v185_v21 = vadd.f32 %v584_v41, %v184_v19 }
  0xfa   :  { %v203_v22 = vpack.c.bf16 %v193_v18, %v190_v17 }
  0xfb   :  { %v202_v23 = vpack.c.bf16 %v185_v21, %v182_v20 }
  0xfc   :  { %v211_v25 = vmax.bf16 %v758_v52, %v203_v22 }
  0xfd   :  { %v210_v24 = vmax.bf16 %v758_v52, %v202_v23 }
  0xff   :  { %703 = vmatprep.mubr.bf16.mxu1 %v210_v24 }
 0x100   :  { %704 = vmatmul.mubr.bf16.gmra.mrb[12].mxu1 %v211_v25 }
 0x1bb   :  { %v693_v28 = vpop.f32.mrb[0].mxu1 }
 0x1bc   :  { %v317_v30 = vpop.f32.mrb[1].mxu1  ;;  %v326_v32 = vadd.f32 %v693_v28, %v595_v29 }
 0x1bd   :  { %v694_v31 = vpop.f32.mrb[2].mxu1  ;;  %v318_v35 = vadd.f32 %v595_v29, %v317_v30 }
 0x1be   :  { %v329_v33 = vadd.f32 %v694_v31, %v595_v29  ;;  %v320_v34 = vpop.f32.mrb[3].mxu1 }
 0x1bf   :  { %v321_v36 = vadd.f32 %v595_v29, %v320_v34 }
 0x1c0   :  { %v381_v37 = vpack.c.bf16 %v329_v33, %v326_v32 }
 0x1c1   :  { %v380_v38 = vpack.c.bf16 %v321_v36, %v318_v35 }
 0x1c2   :  { %v389_v41 = vmax.bf16 %v758_v52, %v381_v37 }
 0x1c3   :  { %v697_v39 = vpop.f32.mrb[4].mxu1  ;;  %v388_v40 = vmax.bf16 %v758_v52, %v380_v38 }
 0x1c4   :  { %v333_v42 = vpop.f32.mrb[5].mxu1  ;;  %v342_v44 = vadd.f32 %v697_v39, %v595_v29 }
 0x1c5   :  { %v698_v43 = vpop.f32.mrb[6].mxu1  ;;  %723 = vmatprep.mubr.bf16.mxu0 %v388_v40  ;;  %v334_v47 = vadd.f32 %v595_v29, %v333_v42 }
 0x1c6   :  { %v345_v45 = vadd.f32 %v698_v43, %v595_v29  ;;  %v336_v46 = vpop.f32.mrb[7].mxu1  ;;  %724 = vmatmul.mubr.bf16.vlgmr.msra.gmra.mrb[16].mxu0 %v389_v41 }
 0x1c7   :  { %v337_v48 = vadd.f32 %v595_v29, %v336_v46 }
 0x1c8   :  { %v383_v49 = vpack.c.bf16 %v345_v45, %v342_v44 }
 0x1c9   :  { %v382_v50 = vpack.c.bf16 %v337_v48, %v334_v47 }
 0x1ca   :  { %v391_v55 = vmax.bf16 %v758_v52, %v383_v49 }
 0x1cb   :  { %v701_v51 = vpop.f32.mrb[8].mxu1  ;;  %v390_v53 = vmax.bf16 %v758_v52, %v382_v50 }
 0x1cc   :  { %v349_v54 = vpop.f32.mrb[9].mxu1  ;;  %v358_v57 = vadd.f32 %v701_v51, %v595_v29 }
 0x1cd   :  { %v702_v56 = vpop.f32.mrb[10].mxu1  ;;  %727 = vmatprep.mubr.bf16.mxu0 %v390_v53  ;;  %v350_v60 = vadd.f32 %v595_v29, %v349_v54 }
 0x1ce   :  { %v361_v58 = vadd.f32 %v702_v56, %v595_v29  ;;  %v352_v59 = vpop.f32.mrb[11].mxu1  ;;  %728 = vmatmul.mubr.bf16.gmra.mrb[20].mxu0 %v391_v55 }
 0x1cf   :  { %v353_v61 = vadd.f32 %v595_v29, %v352_v59 }
 0x1d0   :  { %v385_v62 = vpack.c.bf16 %v361_v58, %v358_v57 }
 0x1d1   :  { %v384_v63 = vpack.c.bf16 %v353_v61, %v350_v60 }
 0x1d2   :  { %v393_v3 = vmax.bf16 %v758_v52, %v385_v62 }
 0x1d3   :  { %v705_v0 = vpop.f32.mrb[12].mxu1  ;;  %v392_v1 = vmax.bf16 %v758_v52, %v384_v63 }
 0x1d4   :  { %v365_v2 = vpop.f32.mrb[13].mxu1  ;;  %v374_v5 = vadd.f32 %v705_v0, %v595_v29 }
 0x1d5   :  { %v706_v4 = vpop.f32.mrb[14].mxu1  ;;  %731 = vmatprep.mubr.bf16.mxu0 %v392_v1  ;;  %v366_v8 = vadd.f32 %v595_v29, %v365_v2 }
 0x1d6   :  { %v377_v6 = vadd.f32 %v706_v4, %v595_v29  ;;  %v368_v7 = vpop.f32.mrb[15].mxu1  ;;  %732 = vmatmul.mubr.bf16.gmra.mrb[24].mxu0 %v393_v3 }
 0x1d7   :  { %v369_v9 = vadd.f32 %v595_v29, %v368_v7 }
 0x1d8   :  { %v387_v10 = vpack.c.bf16 %v377_v6, %v374_v5 }
 0x1d9   :  { %v386_v11 = vpack.c.bf16 %v369_v9, %v366_v8 }
 0x1da   :  { %v395_v13 = vmax.bf16 %v758_v52, %v387_v10 }
 0x1db   :  { %v394_v12 = vmax.bf16 %v758_v52, %v386_v11 }
 0x1dd   :  { %735 = vmatprep.mubr.bf16.mxu0 %v394_v12 }
 0x1de   :  { %736 = vmatmul.mubr.bf16.gmra.mrb[28].mxu0 %v395_v13 }
 0x299   :  { %v725_v15 = vpop.f32.mrb[16].mxu0 }
 0x29a   :  { %v510_v16 = vadd.f32 %v725_v15, %v604_v14  ;;  %v501_v17 = vpop.f32.mrb[17].mxu0 }
 0x29b   :  { %v502_v18 = vadd.f32 %v604_v14, %v501_v17  ;;  %v726_v19 = vpop.f32.mrb[18].mxu0 }
 0x29c   :  { %566 = vst [vmem:[%s989_s7 + $0x10] sm:$0xff] %v510_v16  ;;  %v513_v20 = vadd.f32 %v726_v19, %v604_v14  ;;  %v504_v21 = vpop.f32.mrb[19].mxu0 }
 0x29d   :  { %564 = vst [vmem:[%s989_s7] sm:$0xff] %v502_v18  ;;  %v505_v52 = vadd.f32 %v604_v14, %v504_v21 }
 0x29e   :  { %567 = vst [vmem:[%s989_s7 + $0x18] sm:$0xff] %v513_v20 }
 0x29f   :  { %565 = vst [vmem:[%s989_s7 + $0x8] sm:$0xff] %v505_v52 }
 0x2a1   :  { %v729_v22 = vpop.f32.mrb[20].mxu0 }
 0x2a2   :  { %v526_v23 = vadd.f32 %v729_v22, %v604_v14  ;;  %v517_v24 = vpop.f32.mrb[21].mxu0 }
 0x2a3   :  { %v518_v25 = vadd.f32 %v604_v14, %v517_v24  ;;  %v730_v26 = vpop.f32.mrb[22].mxu0 }
 0x2a4   :  { %570 = vst [vmem:[%s989_s7 + $0x30] sm:$0xff] %v526_v23  ;;  %v529_v27 = vadd.f32 %v730_v26, %v604_v14  ;;  %v520_v28 = vpop.f32.mrb[23].mxu0 }
 0x2a5   :  { %568 = vst [vmem:[%s989_s7 + $0x20] sm:$0xff] %v518_v25  ;;  %v521_v29 = vadd.f32 %v604_v14, %v520_v28 }
 0x2a6   :  { %571 = vst [vmem:[%s989_s7 + $0x38] sm:$0xff] %v529_v27 }
 0x2a7   :  { %569 = vst [vmem:[%s989_s7 + $0x28] sm:$0xff] %v521_v29 }
 0x2a9   :  { %v733_v30 = vpop.f32.mrb[24].mxu0 }
 0x2aa   :  { %v542_v31 = vadd.f32 %v733_v30, %v604_v14  ;;  %v533_v32 = vpop.f32.mrb[25].mxu0 }
 0x2ab   :  { %v534_v33 = vadd.f32 %v604_v14, %v533_v32  ;;  %v734_v34 = vpop.f32.mrb[26].mxu0 }
 0x2ac   :  { %574 = vst [vmem:[%s989_s7 + $0x50] sm:$0xff] %v542_v31  ;;  %v545_v35 = vadd.f32 %v734_v34, %v604_v14  ;;  %v536_v36 = vpop.f32.mrb[27].mxu0 }
 0x2ad   :  { %572 = vst [vmem:[%s989_s7 + $0x40] sm:$0xff] %v534_v33  ;;  %v537_v37 = vadd.f32 %v604_v14, %v536_v36 }
 0x2ae   :  { %575 = vst [vmem:[%s989_s7 + $0x58] sm:$0xff] %v545_v35 }
 0x2af   :  { %573 = vst [vmem:[%s989_s7 + $0x48] sm:$0xff] %v537_v37 }
 0x2b1   :  { %v737_v38 = vpop.f32.mrb[28].mxu0 }
 0x2b2   :  { %v558_v39 = vadd.f32 %v737_v38, %v604_v14  ;;  %v549_v40 = vpop.f32.mrb[29].mxu0 }
 0x2b3   :  { %v550_v41 = vadd.f32 %v604_v14, %v549_v40  ;;  %v738_v42 = vpop.f32.mrb[30].mxu0 }
 0x2b4   :  { %578 = vst [vmem:[%s989_s7 + $0x70] sm:$0xff] %v558_v39  ;;  %v561_v43 = vadd.f32 %v738_v42, %v604_v14  ;;  %v552_v44 = vpop.f32.mrb[31].mxu0 }
 0x2b5   :  { %576 = vst [vmem:[%s989_s7 + $0x60] sm:$0xff] %v550_v41  ;;  %v553_v45 = vadd.f32 %v604_v14, %v552_v44 }
 0x2b6   :  { %579 = vst [vmem:[%s989_s7 + $0x78] sm:$0xff] %v561_v43 }
 0x2b7   :  { %577 = vst [vmem:[%s989_s7 + $0x68] sm:$0xff] %v553_v45 }

</bundles_post_ra>
